<compile_context>
chip_gen: v6e
topology: v6e:2x2x1
jax: 0.10.0
libtpu: 0.0.40
codegen_flags: <defaults>
</compile_context>

<pallas_src>
import functools

import jax
import jax.numpy as jnp
from jax.experimental import pallas as pl
from jax.experimental.pallas import tpu as pltpu


def convblock_kernel(lhs_ref, bw_ref, bias_ref, gamma_ref, beta_ref, gavg_ref,
                     o_ref, *, nb, h, eps):
    """One grid step = `nb` batch elements, fully lane-dense layout.

    lhs_ref  : (nb*H, 3*W*Cin)   bf16  row-im2col LHS (vertical taps concat'd)
    bw_ref   : (3*W*Cin, W*Cout) bf16  block-banded conv weight
    bias_ref : (1, W*Cout)       f32   conv bias, channel-interleaved per lane
    gamma_ref: (1, W*Cout)       f32   GroupNorm weight, channel-interleaved
    beta_ref : (1, W*Cout)       f32   GroupNorm bias, channel-interleaved
    gavg_ref : (W*Cout, W*Cout)  f32   lane -> per-group-mean averaging operator
    o_ref    : (nb*H, W*Cout)    f32   output rows (NHWC-contiguous, lane-dense)
    """
    wc = o_ref.shape[-1]

    # Entire 3x3 conv over all nb images as ONE MXU matmul (bf16 in, f32 acc).
    conv = jnp.dot(lhs_ref[...], bw_ref[...],
                   preferred_element_type=jnp.float32)         # (nb*h, W*Cout)
    conv = conv + bias_ref[...]

    # GroupNorm statistics, batched over all nb samples in this grid step.
    # The (nb*h, WC) -> (nb, h, WC) reshape is tile-aligned (h % 8 == 0,
    # WC % 128 == 0) so it is a free re-view, not a relayout.
    c3 = conv.reshape(nb, h, wc)
    gavg = gavg_ref[...]

    # Pass 1: per-(sample, group) mean.  Sublane-reduce the h rows (XLU), then
    # one small MXU matmul that simultaneously sums over all lanes of a group,
    # divides by the element count and broadcasts back to every lane.
    mean = jnp.dot(jnp.sum(c3, axis=1), gavg,
                   preferred_element_type=jnp.float32)         # (nb, W*Cout)
    cc = c3 - mean[:, None, :]

    # Pass 2: centered variance (numerically safe two-pass GroupNorm).
    var = jnp.dot(jnp.sum(cc * cc, axis=1), gavg,
                  preferred_element_type=jnp.float32)          # (nb, W*Cout)

    # GroupNorm affine folded into one per-(sample, lane) scale / shift.
    scale = jax.lax.rsqrt(var + eps) * gamma_ref[...]          # (nb, W*Cout)
    y = cc * scale[:, None, :] + beta_ref[...]                 # (nb, h, W*Cout)

    # SiLU + single lane-dense store of the whole block (full 128-lane rows).
    o_ref[...] = (y * jax.nn.sigmoid(y)).reshape(nb * h, wc).astype(o_ref.dtype)


def _build_banded_weight(weight_oihw, W):
    """(Cout, Cin, 3, 3) OIHW -> (3*W*Cin, W*Cout) block-banded matrix.

    Row index = kh*(W*Cin) + wi*Cin + ci  (vertical tap kh, input column wi, ci)
    Col index = wo*Cout + co              (output column wo, channel co)
    Entry     = weight[co, ci, kh, wi-wo+1] if 0 <= wi-wo+1 < 3 else 0.
    The zero band implements the horizontal padding=1; vertical padding is
    folded into the LHS row gather (see conv_block).
    """
    Cout, Cin, KH, KW = weight_oihw.shape
    w_hwio = jnp.transpose(weight_oihw, (2, 3, 1, 0))          # (KH, KW, Cin, Cout)
    wi = jnp.arange(W)
    wo = jnp.arange(W)
    blocks = []
    for kh in range(KH):
        b = jnp.zeros((W, Cin, W, Cout), jnp.float32)
        for kw in range(KW):
            sel = (wi[:, None] == (wo[None, :] + kw - 1)).astype(jnp.float32)
            b = b + sel[:, None, :, None] * w_hwio[kh, kw][None, :, None, :]
        blocks.append(b.reshape(W * Cin, W * Cout))
    return jnp.concatenate(blocks, axis=0)                     # (3*W*Cin, W*Cout)


def _pick_batch_block(n):
    # Fold several batch elements into one grid step (amortize ~0.35us/step,
    # taller matmul M); blocks stay tiny in VMEM at these channel counts.
    for nb in (8, 4, 2, 1):
        if n % nb == 0:
            return nb
    return 1


def conv_block(x_nchw, weight, bias, gamma, beta, *, groups=4, eps=1e-5,
               matmul_dtype=jnp.bfloat16):
    """Forward pass of ConvBlock. x_nchw: (N, Cin, H, W) -> (N, Cout, H, W)."""
    N, Cin, H, W = x_nchw.shape
    Cout = weight.shape[0]
    assert weight.shape == (Cout, Cin, 3, 3)
    assert Cout % groups == 0
    assert H % 8 == 0, "H must be a sublane multiple for the free 3-D re-view"
    WC = W * Cout                       # lane width of the compute layout (128)
    K = 3 * W * Cin                     # contraction size of the fused matmul

    # ---- wrapper glue (plain XLA) -------------------------------------------
    # NCHW -> NHWC rows; build the row-im2col LHS: for each output row h,
    # concat input rows (h-1, h, h+1), zero rows at the vertical borders
    # (this replaces a separate jnp.pad of the whole activation).
    x_nhwc = jnp.transpose(x_nchw, (0, 2, 3, 1)).astype(jnp.float32)
    xr = x_nhwc.reshape(N, H, W * Cin)
    z = jnp.zeros((N, 1, W * Cin), jnp.float32)
    lhs = jnp.concatenate(
        [jnp.concatenate([z, xr[:, :-1]], axis=1),    # input row h-1
         xr,                                          # input row h
         jnp.concatenate([xr[:, 1:], z], axis=1)],    # input row h+1
        axis=-1).reshape(N * H, K).astype(matmul_dtype)

    bw = _build_banded_weight(weight.astype(jnp.float32), W).astype(matmul_dtype)

    # Channel-interleaved per-lane parameter vectors (lane = wo*Cout + co).
    bias_lane = jnp.tile(bias.astype(jnp.float32), W).reshape(1, WC)
    gamma_lane = jnp.tile(gamma.astype(jnp.float32), W).reshape(1, WC)
    beta_lane = jnp.tile(beta.astype(jnp.float32), W).reshape(1, WC)

    # Group averaging operator: gavg[l', l] = 1/count if lane l' and lane l
    # belong to the same GroupNorm group (count = H*W*Cpg), else 0.
    g_of_lane = (jnp.arange(WC) % Cout) // (Cout // groups)
    gavg = (g_of_lane[:, None] == g_of_lane[None, :]).astype(jnp.float32)
    gavg = gavg / float(H * W * (Cout // groups))

    nb = _pick_batch_block(N)
    rows = nb * H
    grid = (N // nb,)

    msize = 2 if matmul_dtype == jnp.bfloat16 else 4
    cost = pl.CostEstimate(
        flops=2 * N * H * K * WC + 4 * N * WC * WC + 10 * N * H * WC,
        transcendentals=N * H * WC + N * WC,
        bytes_accessed=(N * H * K + K * WC) * msize
                       + (N * H * WC + WC * WC + 3 * WC) * 4)

    out2d = pl.pallas_call(
        functools.partial(convblock_kernel, nb=nb, h=H, eps=float(eps)),
        out_shape=jax.ShapeDtypeStruct((N * H, WC), jnp.float32),
        grid_spec=pltpu.PrefetchScalarGridSpec(
            num_scalar_prefetch=0,
            grid=grid,
            in_specs=[
                pl.BlockSpec((rows, K), lambda b: (b, 0)),     # LHS rows
                pl.BlockSpec((K, WC), lambda b: (0, 0)),       # banded weight
                pl.BlockSpec((1, WC), lambda b: (0, 0)),       # bias
                pl.BlockSpec((1, WC), lambda b: (0, 0)),       # gamma
                pl.BlockSpec((1, WC), lambda b: (0, 0)),       # beta
                pl.BlockSpec((WC, WC), lambda b: (0, 0)),      # group averaging
            ],
            out_specs=pl.BlockSpec((rows, WC), lambda b: (b, 0)),
        ),
        compiler_params=pltpu.CompilerParams(
            dimension_semantics=("parallel",)),
        cost_estimate=cost,
    )(lhs, bw, bias_lane, gamma_lane, beta_lane, gavg)

    # (N*H, W*Cout) is NHWC-contiguous: reshape is free, one transpose back.
    out_nhwc = out2d.reshape(N, H, W, Cout)
    return jnp.transpose(out_nhwc, (0, 3, 1, 2))


def ref_conv_block(x, w, b, gamma, beta, *, groups, eps=1e-5):
    """Plain-JAX reference matching PyTorch semantics (for verification)."""
    y = jax.lax.conv_general_dilated(
        x, w, window_strides=(1, 1), padding=((1, 1), (1, 1)),
        dimension_numbers=("NCHW", "OIHW", "NCHW"))
    y = y + b[None, :, None, None]
    N, C, H, W = y.shape
    yg = y.reshape(N, groups, C // groups, H, W)
    mean = yg.mean(axis=(2, 3, 4), keepdims=True)
    var = yg.var(axis=(2, 3, 4), keepdims=True)
    yn = ((yg - mean) / jnp.sqrt(var + eps)).reshape(N, C, H, W)
    yn = yn * gamma[None, :, None, None] + beta[None, :, None, None]
    return yn * jax.nn.sigmoid(yn)


if __name__ == "__main__":
    # Small shapes consistent with the module: in=4, out=8, groups=4, 16x16.
    N, Cin, Cout, Hsz, Wsz, G = 2, 4, 8, 16, 16, 4

    key = jax.random.PRNGKey(0)
    kx, kw, kb, kg, kbe = jax.random.split(key, 5)
    x = jax.random.normal(kx, (N, Cin, Hsz, Wsz), jnp.float32)
    weight = jax.random.normal(kw, (Cout, Cin, 3, 3), jnp.float32) * 0.2
    bias = jax.random.normal(kb, (Cout,), jnp.float32) * 0.1
    gamma = 1.0 + 0.1 * jax.random.normal(kg, (Cout,), jnp.float32)
    beta = 0.1 * jax.random.normal(kbe, (Cout,), jnp.float32)

    out = conv_block(x, weight, bias, gamma, beta, groups=G)
    out = jax.block_until_ready(out)

    ref = ref_conv_block(x, weight, bias, gamma, beta, groups=G)
    assert out.shape == (N, Cout, Hsz, Wsz)
    max_err = float(jnp.max(jnp.abs(out - ref)))
    # bf16 matmul operands (f32 accumulate) -> slightly relaxed tolerance.
    assert jnp.allclose(out, ref, atol=2e-2, rtol=2e-2), max_err

    print("KERNEL_OK")
</pallas_src>

<mosaic_0001>
module attributes {stable_mosaic.version = 11 : i64} {
  func.func @convblock_kernel(%arg0: i32, %arg1: memref<32x192xbf16, #tpu.memory_space<vmem>>, %arg2: memref<192x128xbf16, #tpu.memory_space<vmem>>, %arg3: memref<1x128xf32, #tpu.memory_space<vmem>>, %arg4: memref<1x128xf32, #tpu.memory_space<vmem>>, %arg5: memref<1x128xf32, #tpu.memory_space<vmem>>, %arg6: memref<128x128xf32, #tpu.memory_space<vmem>>, %arg7: memref<32x128xf32, #tpu.memory_space<vmem>>) attributes {dimension_semantics = [#tpu.dimension_semantics<parallel>], iteration_bounds = array<i64: 1>, scalar_prefetch = 0 : i64, scratch_operands = 0 : i64, tpu.core_type = #tpu.core_type<tc>, window_params = [{transform_indices = @transform_0, window_bounds = array<i64: 32, 192>}, {pipeline_mode = #tpu.pipeline_mode<synchronous>, transform_indices = @transform_1, window_bounds = array<i64: 192, 128>}, {pipeline_mode = #tpu.pipeline_mode<synchronous>, transform_indices = @transform_2, window_bounds = array<i64: 1, 128>}, {pipeline_mode = #tpu.pipeline_mode<synchronous>, transform_indices = @transform_3, window_bounds = array<i64: 1, 128>}, {pipeline_mode = #tpu.pipeline_mode<synchronous>, transform_indices = @transform_4, window_bounds = array<i64: 1, 128>}, {pipeline_mode = #tpu.pipeline_mode<synchronous>, transform_indices = @transform_5, window_bounds = array<i64: 128, 128>}, {transform_indices = @transform_6, window_bounds = array<i64: 32, 128>}]} {
    %c0 = arith.constant 0 : index
    %c0_0 = arith.constant 0 : index
    %0 = vector.load %arg1[%c0, %c0_0] : memref<32x192xbf16, #tpu.memory_space<vmem>>, vector<32x192xbf16>
    %c0_1 = arith.constant 0 : index
    %c0_2 = arith.constant 0 : index
    %1 = vector.load %arg2[%c0_1, %c0_2] : memref<192x128xbf16, #tpu.memory_space<vmem>>, vector<192x128xbf16>
    %cst = arith.constant dense<0.000000e+00> : vector<32x128xf32>
    %2 = tpu.matmul %0, %1, %cst {dimension_numbers = #tpu.dot_dimension_numbers<[1], [0], [0], [1], [0, 0, 1, 1], [], []>} : vector<32x192xbf16>, vector<192x128xbf16>, vector<32x128xf32> -> vector<32x128xf32>
    %c0_3 = arith.constant 0 : index
    %c0_4 = arith.constant 0 : index
    %3 = vector.load %arg3[%c0_3, %c0_4] : memref<1x128xf32, #tpu.memory_space<vmem>>, vector<1x128xf32>
    %4 = vector.broadcast %3 : vector<1x128xf32> to vector<32x128xf32>
    %5 = arith.addf %2, %4 : vector<32x128xf32>
    %6 = vector.shape_cast %5 : vector<32x128xf32> to vector<2x16x128xf32>
    %c0_5 = arith.constant 0 : index
    %c0_6 = arith.constant 0 : index
    %7 = vector.load %arg6[%c0_5, %c0_6] : memref<128x128xf32, #tpu.memory_space<vmem>>, vector<128x128xf32>
    %cst_7 = arith.constant dense<0.000000e+00> : vector<2x128xf32>
    %8 = vector.multi_reduction <add>, %6, %cst_7 [1] : vector<2x16x128xf32> to vector<2x128xf32>
    %cst_8 = arith.constant dense<0.000000e+00> : vector<2x128xf32>
    %9 = tpu.matmul %8, %7, %cst_8 {dimension_numbers = #tpu.dot_dimension_numbers<[1], [0], [0], [1], [0, 0, 1, 1], [], []>} : vector<2x128xf32>, vector<128x128xf32>, vector<2x128xf32> -> vector<2x128xf32>
    %10 = vector.shape_cast %9 : vector<2x128xf32> to vector<2x1x128xf32>
    %11 = vector.broadcast %10 : vector<2x1x128xf32> to vector<2x16x128xf32>
    %12 = arith.subf %6, %11 : vector<2x16x128xf32>
    %13 = arith.mulf %12, %12 : vector<2x16x128xf32>
    %cst_9 = arith.constant dense<0.000000e+00> : vector<2x128xf32>
    %14 = vector.multi_reduction <add>, %13, %cst_9 [1] : vector<2x16x128xf32> to vector<2x128xf32>
    %cst_10 = arith.constant dense<0.000000e+00> : vector<2x128xf32>
    %15 = tpu.matmul %14, %7, %cst_10 {dimension_numbers = #tpu.dot_dimension_numbers<[1], [0], [0], [1], [0, 0, 1, 1], [], []>} : vector<2x128xf32>, vector<128x128xf32>, vector<2x128xf32> -> vector<2x128xf32>
    %cst_11 = arith.constant 9.99999974E-6 : f32
    %16 = vector.broadcast %cst_11 : f32 to vector<2x128xf32>
    %17 = arith.addf %15, %16 : vector<2x128xf32>
    %18 = math.rsqrt %17 : vector<2x128xf32>
    %c0_12 = arith.constant 0 : index
    %c0_13 = arith.constant 0 : index
    %19 = vector.load %arg4[%c0_12, %c0_13] : memref<1x128xf32, #tpu.memory_space<vmem>>, vector<1x128xf32>
    %20 = vector.broadcast %19 : vector<1x128xf32> to vector<2x128xf32>
    %21 = arith.mulf %18, %20 : vector<2x128xf32>
    %22 = vector.shape_cast %21 : vector<2x128xf32> to vector<2x1x128xf32>
    %23 = vector.broadcast %22 : vector<2x1x128xf32> to vector<2x16x128xf32>
    %24 = arith.mulf %12, %23 : vector<2x16x128xf32>
    %c0_14 = arith.constant 0 : index
    %c0_15 = arith.constant 0 : index
    %25 = vector.load %arg5[%c0_14, %c0_15] : memref<1x128xf32, #tpu.memory_space<vmem>>, vector<1x128xf32>
    %26 = vector.shape_cast %25 : vector<1x128xf32> to vector<1x1x128xf32>
    %27 = vector.broadcast %26 : vector<1x1x128xf32> to vector<2x16x128xf32>
    %28 = arith.addf %24, %27 : vector<2x16x128xf32>
    %29 = arith.negf %28 : vector<2x16x128xf32>
    %30 = math.exp %29 : vector<2x16x128xf32>
    %cst_16 = arith.constant 1.000000e+00 : f32
    %31 = vector.broadcast %cst_16 : f32 to vector<2x16x128xf32>
    %32 = arith.addf %31, %30 : vector<2x16x128xf32>
    %33 = arith.divf %31, %32 : vector<2x16x128xf32>
    %34 = arith.mulf %28, %33 : vector<2x16x128xf32>
    %35 = vector.shape_cast %34 : vector<2x16x128xf32> to vector<32x128xf32>
    %c0_17 = arith.constant 0 : index
    %c0_18 = arith.constant 0 : index
    %36 = vector.load %arg7[%c0_17, %c0_18] : memref<32x128xf32, #tpu.memory_space<vmem>>, vector<32x128xf32>
    tpu.vector_store %arg7[%c0_17, %c0_18], %35 {strides = array<i32>} : memref<32x128xf32, #tpu.memory_space<vmem>>, vector<32x128xf32>,
    return
  }
  func.func @transform_0(%arg0: i32) -> (i32, i32) {
    %c0_i32 = arith.constant 0 : i32
    %c0_i32_0 = arith.constant 0 : i32
    return %arg0, %c0_i32 : i32, i32
  }
  func.func @transform_1(%arg0: i32) -> (i32, i32) {
    %c0_i32 = arith.constant 0 : i32
    %c0_i32_0 = arith.constant 0 : i32
    %c0_i32_1 = arith.constant 0 : i32
    return %c0_i32, %c0_i32_0 : i32, i32
  }
  func.func @transform_2(%arg0: i32) -> (i32, i32) {
    %c0_i32 = arith.constant 0 : i32
    %c0_i32_0 = arith.constant 0 : i32
    %c0_i32_1 = arith.constant 0 : i32
    return %c0_i32, %c0_i32_0 : i32, i32
  }
  func.func @transform_3(%arg0: i32) -> (i32, i32) {
    %c0_i32 = arith.constant 0 : i32
    %c0_i32_0 = arith.constant 0 : i32
    %c0_i32_1 = arith.constant 0 : i32
    return %c0_i32, %c0_i32_0 : i32, i32
  }
  func.func @transform_4(%arg0: i32) -> (i32, i32) {
    %c0_i32 = arith.constant 0 : i32
    %c0_i32_0 = arith.constant 0 : i32
    %c0_i32_1 = arith.constant 0 : i32
    return %c0_i32, %c0_i32_0 : i32, i32
  }
  func.func @transform_5(%arg0: i32) -> (i32, i32) {
    %c0_i32 = arith.constant 0 : i32
    %c0_i32_0 = arith.constant 0 : i32
    %c0_i32_1 = arith.constant 0 : i32
    return %c0_i32, %c0_i32_0 : i32, i32
  }
  func.func @transform_6(%arg0: i32) -> (i32, i32) {
    %c0_i32 = arith.constant 0 : i32
    %c0_i32_0 = arith.constant 0 : i32
    return %arg0, %c0_i32 : i32, i32
  }
}

</mosaic_0001>

<bundles_post_ra>
// kernel: tpu_custom_call.1
= control target key start
LH: loop header
LB: loop body
LE: loop exit
PB: predicated region body
PF: predicated region fallthrough
CT: control target
= control target key end

     0   :  { %11 = vsyncpa [#allocation3], 0  ;;  %s1048_s0 = inlined_call_operand.hbm [shape: bf16[32,192], index: 0, kind: input, shape index: {}]   ;;  %s1049_s1 = inlined_call_operand.hbm [shape: bf16[192,128], index: 1, kind: input, shape index: {}]   ;;  %s1050_s2 = inlined_call_operand.vmem [shape: f32[1,128], index: 2, kind: input, shape index: {}]   ;;  %s1051_s3 = inlined_call_operand.vmem [shape: f32[1,128], index: 3, kind: input, shape index: {}]   ;;  %s1052_s4 = inlined_call_operand.vmem [shape: f32[1,128], index: 4, kind: input, shape index: {}]   ;;  %s1053_s5 = inlined_call_operand.hbm [shape: f32[128,128], index: 5, kind: input, shape index: {}]   ;;  %s1054_s6 = inlined_call_operand.hbm [shape: f32[32,128], index: 6, kind: output, shape index: {}]  }
   0x1   :  { %12 = vsyncpa [#allocation6], 0 }
   0x2   :  { %13 = vsyncpa [#allocation4], 0  ;;  %s851_s21 = smov [#allocation5]  }
   0x3   :  { %s31_s22 = sshll.u32 %s851_s21, 4  ;;  %s32_s22 = int_to_ptr.vmem [resolvable:$true] %s31_s22 }
   0x4   :  { %s773_s23 = scalar_lea.vmem %s32_s22, 1536  ;;  %p778_p1 = scmp.lt.s32.totalorder %s32_s22, %s32_s22 }
   0x5   :  { %p774_p0 = scmp.ne.s32.totalorder %s32_s22, %s773_s23  ;;  %p779_p2 = scmp.lt.s32.totalorder %s773_s23, %s773_s23 }
   0x7   :  { %p780_p3 = por %p779_p2, %p778_p1 }
   0x9   :  { %p781_p4 = pnand %p780_p3, %p774_p0 }
   0xb   :  { %784 = shalt.err (!%p781_p4)
}
   0xc   :  { %s852_s24 = smov 64   ;;  %s853_s25 = smov 4  }
   0xd   :  { %37 = dma.hbm_to_vmem [thread:$0]  %s1049_s1, 1536, %s32_s22, [#allocation6], %s852_s24, %s852_s24, %s853_s25  }
   0xe   :  { %s854_s28 = smov [#allocation2]  }
   0xf   :  { %s19_s29 = sshll.u32 %s854_s28, 4  ;;  %s20_s29 = int_to_ptr.vmem [resolvable:$true] %s19_s29 }
  0x10   :  { %s793_s30 = scalar_lea.vmem %s20_s29, 512  ;;  %p798_p6 = scmp.lt.s32.totalorder %s20_s29, %s20_s29 }
  0x11   :  { %p794_p5 = scmp.ne.s32.totalorder %s20_s29, %s793_s30  ;;  %p799_p7 = scmp.lt.s32.totalorder %s793_s30, %s793_s30 }
  0x13   :  { %p800_p8 = por %p799_p7, %p798_p6 }
  0x15   :  { %p801_p9 = pnand %p800_p8, %p794_p5 }
  0x17   :  { %804 = shalt.err (!%p801_p9)
}
  0x18   :  { %s855_s7 = smov 128   ;;  %s856_s8 = smov 8  }
  0x19   :  { %25 = dma.hbm_to_vmem [thread:$0]  %s1048_s0, 512, %s20_s29, [#allocation3], %s855_s7, %s855_s7, %s856_s8  }
  0x1a   :  { %s857_s1 = smov [#allocation7]  }
  0x1b   :  { %s49_s11 = sshll.u32 %s857_s1, 4  ;;  %s50_s11 = int_to_ptr.vmem [resolvable:$true] %s49_s11 }
  0x1c   :  { %s813_s12 = scalar_lea.vmem %s50_s11, 2048  ;;  %p818_p11 = scmp.lt.s32.totalorder %s50_s11, %s50_s11 }
  0x1d   :  { %p814_p10 = scmp.ne.s32.totalorder %s50_s11, %s813_s12  ;;  %p819_p12 = scmp.lt.s32.totalorder %s813_s12, %s813_s12 }
  0x1f   :  { %p820_p13 = por %p819_p12, %p818_p11 }
  0x21   :  { %p821_p0 = pnand %p820_p13, %p814_p10 }
  0x23   :  { %824 = shalt.err (!%p821_p0)
}
  0x24   :  { %55 = dma.hbm_to_vmem [thread:$0]  %s1053_s5, 2048, %s50_s11, [#allocation6], %s855_s7, %s855_s7, %s856_s8  }
  0x25   :  { %845 = dma.done.wait [#allocation3], 512  }
  0x26   :  { %846 = vsyncadd [#allocation3], 4294966784 }
  0x27   :  { %847 = dma.done.wait [#allocation6], 3584  }
  0x28   :  { %848 = vsyncadd [#allocation6], 4294963712  ;;  %v858_v0 = vmov 0   ;;  %v859_v1 = vmov 0.0   ;;  %v729_v2 = vld [vmem:[#allocation5 + $0x38] sm:$0xff]   ;;  %v730_v3 = vld [vmem:[#allocation5 + $0x30] sm:$0xff]  }
  0x29   :  { %198 = vmatprep.subr.bf16.mxu0 %v858_v0  ;;  %647 = vmatprep.subr.mxu1 %v859_v1  ;;  %v731_v4 = vld [vmem:[#allocation5 + $0x28] sm:$0xff]   ;;  %v732_v5 = vld [vmem:[#allocation5 + $0x20] sm:$0xff]   ;;  %vm191_vm0 = vcmask 523264   ;;  %v733_v7 = vld [vmem:[#allocation5 + $0x18] sm:$0xff]   ;;  %vm860_vm1 = vmmov 0   ;;  %vm279_vm2 = vcmask 1041409  }
  0x2a   :  { %199 = vmatpush1.bf16.msra.mxu0 %v729_v2  ;;  %v743_v6 = vld [vmem:[#allocation2 + $0x4] ss:$8 sps:$4 sm:$0xff]   ;;  %v914_v8 = vld [vmem:[#allocation7 + $0x78] sm:$0xff]  ;;  %v734_v9 = vld [vmem:[#allocation5 + $0x10] sm:$0xff]   ;;  %679 = vmatprep.mubr.msk.f32.mxu1 %vm860_vm1, %v859_v1  ;;  %v861_v62 = vmov 1966171168  }
  0x2b   :  { %200 = vmatprep.subr.bf16.mxu0 %v858_v0  ;;  %605 = vmatprep.mubr.msk.bf16.mxu0 %vm191_vm0, %v743_v6  ;;  %v735_v10 = vld [vmem:[#allocation5 + $0x8] sm:$0xff]   ;;  %v736_v11 = vld [vmem:[#allocation5] sm:$0xff]   ;;  %v737_v12 = vld [vmem:[#allocation5 + $0x58] sm:$0xff]   ;;  %v354_v63 = vunpack.c.l.s4 %v861_v62 }
  0x2c   :  { %648 = vmatpush3.msra.mxu1 %v914_v8  ;;  %v738_v13 = vld [vmem:[#allocation5 + $0x50] sm:$0xff]   ;;  %v739_v14 = vld [vmem:[#allocation5 + $0x48] sm:$0xff]   ;;  %v740_v15 = vld [vmem:[#allocation5 + $0x40] sm:$0xff]  }
  0x2d   :  { %649 = vmatprep.subr.mxu1 %v859_v1  ;;  %v741_v16 = vld [vmem:[#allocation2] ss:$8 sps:$4 sm:$0xff]   ;;  %v744_v17 = vld [vmem:[#allocation2 + $0x14] ss:$8 sps:$4 sm:$0xff]   ;;  %v746_v18 = vld [vmem:[#allocation2 + $0x10] ss:$8 sps:$4 sm:$0xff]   ;;  %v355_v2 = vunpack.c.0.s8 %v354_v63 }
  0x2e   :  { %201 = vmatpush1.bf16.msra.mxu0 %v730_v3  ;;  %v920_v19 = vld [vmem:[#allocation7 + $0x70] sm:$0xff]  ;;  %v924_v20 = vld [vmem:[#allocation7 + $0x68] sm:$0xff]  ;;  %v928_v21 = vld [vmem:[#allocation7 + $0x60] sm:$0xff] }
  0x2f   :  { %202 = vmatprep.subr.bf16.mxu0 %v858_v0  ;;  %650 = vmatpush3.msra.mxu1 %v920_v19  ;;  %v932_v22 = vld [vmem:[#allocation7 + $0x58] sm:$0xff]  ;;  %v936_v23 = vld [vmem:[#allocation7 + $0x50] sm:$0xff]  ;;  %v940_v24 = vld [vmem:[#allocation7 + $0x48] sm:$0xff] }
  0x30   :  { %651 = vmatprep.subr.mxu1 %v859_v1  ;;  %v944_v25 = vld [vmem:[#allocation7 + $0x40] sm:$0xff]  ;;  %v948_v26 = vld [vmem:[#allocation7 + $0x38] sm:$0xff]  ;;  %v952_v27 = vld [vmem:[#allocation7 + $0x30] sm:$0xff] }
  0x31   :  { %652 = vmatpush3.msra.mxu1 %v924_v20  ;;  %v956_v28 = vld [vmem:[#allocation7 + $0x28] sm:$0xff]  ;;  %v960_v29 = vld [vmem:[#allocation7 + $0x20] sm:$0xff]  ;;  %v964_v30 = vld [vmem:[#allocation7 + $0x18] sm:$0xff] }
  0x32   :  { %203 = vmatpush1.bf16.msra.mxu0 %v731_v4  ;;  %653 = vmatprep.subr.mxu1 %v859_v1  ;;  %v967_v31 = vld [vmem:[#allocation7 + $0x10] sm:$0xff]  ;;  %v970_v32 = vld [vmem:[#allocation7 + $0x8] sm:$0xff]  ;;  %v976_v33 = vld [vmem:[#allocation7] sm:$0xff] }
  0x33   :  { %204 = vmatprep.subr.bf16.mxu0 %v858_v0  ;;  %654 = vmatpush3.msra.mxu1 %v928_v21  ;;  %v588_v35 = vld [vmem:[%s1050_s2] ss:$0 sm:$0xff] }
  0x34   :  { %655 = vmatprep.subr.mxu1 %v859_v1 }
  0x35   :  { %656 = vmatpush3.msra.mxu1 %v932_v22 }
  0x36   :  { %205 = vmatpush1.bf16.msra.mxu0 %v732_v5  ;;  %657 = vmatprep.subr.mxu1 %v859_v1 }
  0x37   :  { %206 = vmatprep.subr.bf16.mxu0 %v858_v0  ;;  %658 = vmatpush3.msra.mxu1 %v936_v23 }
  0x38   :  { %659 = vmatprep.subr.mxu1 %v859_v1 }
  0x39   :  { %660 = vmatpush3.msra.mxu1 %v940_v24 }
  0x3a   :  { %207 = vmatpush1.bf16.msra.mxu0 %v733_v7  ;;  %661 = vmatprep.subr.mxu1 %v859_v1 }
  0x3b   :  { %208 = vmatprep.subr.bf16.mxu0 %v858_v0  ;;  %662 = vmatpush3.msra.mxu1 %v944_v25 }
  0x3c   :  { %663 = vmatprep.subr.mxu1 %v859_v1 }
  0x3d   :  { %664 = vmatpush3.msra.mxu1 %v948_v26 }
  0x3e   :  { %209 = vmatpush1.bf16.msra.mxu0 %v734_v9  ;;  %665 = vmatprep.subr.mxu1 %v859_v1 }
  0x3f   :  { %210 = vmatprep.subr.bf16.mxu0 %v858_v0  ;;  %666 = vmatpush3.msra.mxu1 %v952_v27 }
  0x40   :  { %667 = vmatprep.subr.mxu1 %v859_v1 }
  0x41   :  { %668 = vmatpush3.msra.mxu1 %v956_v28 }
  0x42   :  { %211 = vmatpush1.bf16.msra.mxu0 %v735_v10  ;;  %669 = vmatprep.subr.mxu1 %v859_v1 }
  0x43   :  { %212 = vmatprep.subr.bf16.mxu0 %v858_v0  ;;  %670 = vmatpush3.msra.mxu1 %v960_v29 }
  0x44   :  { %671 = vmatprep.subr.mxu1 %v859_v1 }
  0x45   :  { %672 = vmatpush3.msra.mxu1 %v964_v30 }
  0x46   :  { %213 = vmatpush1.bf16.msra.mxu0 %v736_v11  ;;  %673 = vmatprep.subr.mxu1 %v859_v1 }
  0x47   :  { %222 = vmatprep.subr.bf16.mxu0 %v858_v0  ;;  %674 = vmatpush3.msra.mxu1 %v967_v31 }
  0x48   :  { %675 = vmatprep.subr.mxu1 %v859_v1 }
  0x49   :  { %676 = vmatpush3.msra.mxu1 %v970_v32 }
  0x4a   :  { %223 = vmatpush2.bf16.msra.mxu0 %v737_v12  ;;  %677 = vmatprep.subr.mxu1 %v859_v1 }
  0x4b   :  { %224 = vmatprep.subr.bf16.mxu0 %v858_v0  ;;  %678 = vmatpush3.msra.mxu1 %v976_v33 }
  0x4c   :  { %682 = vmatprep.subr.mxu1 %v859_v1 }
  0x4e   :  { %225 = vmatpush2.bf16.msra.mxu0 %v738_v13 }
  0x4f   :  { %226 = vmatprep.subr.bf16.mxu0 %v858_v0 }
  0x52   :  { %227 = vmatpush2.bf16.msra.mxu0 %v739_v14 }
  0x53   :  { %228 = vmatprep.subr.bf16.mxu0 %v858_v0  ;;  %v356_v0 = vlaneseq }
  0x55   :  { %v357_v3 = vshrl.u32 %v356_v0, 7 }
  0x56   :  { %229 = vmatpush2.bf16.msra.mxu0 %v740_v15 }
  0x57   :  { %v358_v4 = vsub.s32 %v355_v2, %v357_v3  ;;  %v377_v7 = vsub.s32 0, %v357_v3 }
  0x59   :  { %231 = vmatmul.mubr.bf16.vlgmr.msra.gmra.mxu0 %v741_v16 }
  0x5a   :  { %606 = vmatprep.mubr.msk.bf16.mxu0 %vm191_vm0, %v744_v17 }
  0x61   :  { %239 = vmatmul.mubr.bf16.gmra.mxu0 %v746_v18 }
 0x119   :  { %v232_v34 = vpop.f32.mrf.mxu0 }
 0x11a   :  { %v985_v38 = vadd.f32 %v588_v35, %v232_v34 }
 0x11b   :  { %v234_v36 = vpop.f32.mrf.mxu0 }
 0x11d   :  { %v235_v37 = vpop.f32.mrf.mxu0 }
 0x11e   :  { %v987_v39 = vadd.f32 %v588_v35, %v235_v37 }
 0x11f   :  { %v237_v40 = vpop.f32.mrf.mxu0 }
 0x120   :  { %v263_v41 = vadd.f32 %v987_v39, %v985_v38 }
 0x121   :  { %v240_v42 = vpop.f32.mrf.mxu0 }
 0x122   :  { %v264_v43 = vrot.slane %v263_v41, 4  ;;  %v991_v47 = vadd.f32 %v588_v35, %v240_v42 }
 0x123   :  { %v242_v44 = vpop.f32.mrf.mxu0 }
 0x124   :  { %v265_v45 = vadd.f32 %v264_v43, %v263_v41 }
 0x125   :  { %v243_v46 = vpop.f32.mrf.mxu0 }
 0x126   :  { %v993_v48 = vadd.f32 %v588_v35, %v243_v46  ;;  %v266_v50 = vrot.slane %v265_v45, 2 }
 0x127   :  { %v245_v49 = vpop.f32.mrf.mxu0 }
 0x128   :  { %v270_v51 = vadd.f32 %v993_v48, %v991_v47  ;;  %v267_v53 = vadd.f32 %v266_v50, %v265_v45 }
 0x12a   :  { %v271_v52 = vrot.slane %v270_v51, 4  ;;  %v268_v57 = vrot.slane %v267_v53, 1 }
 0x12c   :  { %v272_v54 = vadd.f32 %v271_v52, %v270_v51  ;;  %v269_v59 = vadd.f32 %v268_v57, %v267_v53 }
 0x12e   :  { %v273_v55 = vrot.slane %v272_v54, 2 }
 0x130   :  { %v274_v56 = vadd.f32 %v273_v55, %v272_v54 }
 0x132   :  { %v275_v58 = vrot.slane %v274_v56, 1 }
 0x134   :  { %v276_v60 = vadd.f32 %v275_v58, %v274_v56 }
 0x136   :  { %v280_v61 = vsel %vm279_vm2, %v276_v60, %v269_v59 }
 0x137   :  { %680 = vmatmul.mubr.f32.vlgmr.msra.gmra.mxu1 %v280_v61 }
 0x138   :  { %683 = vmatpush3.msra.mxu1 %v914_v8  ;;  %714 = vmatprep.mubr.msk.f32.mxu1 %vm860_vm1, %v859_v1 }
 0x139   :  { %684 = vmatprep.subr.mxu1 %v859_v1 }
 0x13a   :  { %685 = vmatpush3.msra.mxu1 %v920_v19 }
 0x13b   :  { %686 = vmatprep.subr.mxu1 %v859_v1 }
 0x13c   :  { %687 = vmatpush3.msra.mxu1 %v924_v20 }
 0x13d   :  { %688 = vmatprep.subr.mxu1 %v859_v1 }
 0x13e   :  { %689 = vmatpush3.msra.mxu1 %v928_v21 }
 0x13f   :  { %690 = vmatprep.subr.mxu1 %v859_v1 }
 0x140   :  { %691 = vmatpush3.msra.mxu1 %v932_v22 }
 0x141   :  { %692 = vmatprep.subr.mxu1 %v859_v1 }
 0x142   :  { %693 = vmatpush3.msra.mxu1 %v936_v23 }
 0x143   :  { %694 = vmatprep.subr.mxu1 %v859_v1 }
 0x144   :  { %695 = vmatpush3.msra.mxu1 %v940_v24 }
 0x145   :  { %696 = vmatprep.subr.mxu1 %v859_v1 }
 0x146   :  { %697 = vmatpush3.msra.mxu1 %v944_v25 }
 0x147   :  { %698 = vmatprep.subr.mxu1 %v859_v1 }
 0x148   :  { %699 = vmatpush3.msra.mxu1 %v948_v26 }
 0x149   :  { %700 = vmatprep.subr.mxu1 %v859_v1 }
 0x14a   :  { %701 = vmatpush3.msra.mxu1 %v952_v27 }
 0x14b   :  { %702 = vmatprep.subr.mxu1 %v859_v1 }
 0x14c   :  { %703 = vmatpush3.msra.mxu1 %v956_v28 }
 0x14d   :  { %704 = vmatprep.subr.mxu1 %v859_v1 }
 0x14e   :  { %705 = vmatpush3.msra.mxu1 %v960_v29 }
 0x14f   :  { %706 = vmatprep.subr.mxu1 %v859_v1 }
 0x150   :  { %707 = vmatpush3.msra.mxu1 %v964_v30 }
 0x151   :  { %708 = vmatprep.subr.mxu1 %v859_v1 }
 0x152   :  { %709 = vmatpush3.msra.mxu1 %v967_v31 }
 0x153   :  { %710 = vmatprep.subr.mxu1 %v859_v1 }
 0x154   :  { %711 = vmatpush3.msra.mxu1 %v970_v32 }
 0x155   :  { %712 = vmatprep.subr.mxu1 %v859_v1 }
 0x156   :  { %713 = vmatpush3.msra.mxu1 %v976_v33 }
 0x1f7   :  { %v348_v5 = vpop.f32.mrf.mxu1 }
 0x1f8   :  { %v359_v6 = vrot.slane %v348_v5, %v358_v4 }
 0x1f9   :  { %v681_v8 = vpop.f32.mrf.mxu1 }
 0x1fa   :  { %v360_v9 = vcombine.high %v359_v6, %v359_v6  ;;  %v367_v10 = vrot.slane %v359_v6, %v358_v4 }
 0x1fc   :  { %v374_v11 = vrot.slane %v360_v9, %v358_v4  ;;  %v378_v12 = vrot.slane %v367_v10, %v377_v7 }
 0x1fe   :  { %v382_v13 = vrot.slane %v374_v11, %v377_v7  ;;  %v385_v14 = vsub.f32 %v985_v38, %v378_v12  ;;  %v386_v1 = vsub.f32 %v987_v39, %v378_v12  ;;  %v607_v39 = vld [vmem:[%s1051_s3] ss:$0 sm:$0xff]  ;;  %s862_s3 = smov [#allocation8]  }
 0x200   :  { %v387_v15 = vsub.f32 %v991_v47, %v382_v13  ;;  %v388_v16 = vsub.f32 %v993_v48, %v382_v13  ;;  %v389_v17 = vmul.f32 %v385_v14, %v385_v14  ;;  %v390_v18 = vmul.f32 %v386_v1, %v386_v1  ;;  %v608_v47 = vld [vmem:[%s1052_s4] ss:$0 sm:$0xff]  ;;  %s575_s4 = sshll.u32 %s862_s3, 4  ;;  %s576_s4 = int_to_ptr.vmem [resolvable:$true] %s575_s4 }
 0x201   :  { %s825_s18 = scalar_lea.vmem %s576_s4, 512  ;;  %p830_p2 = scmp.lt.s32.totalorder %s576_s4, %s576_s4 }
 0x202   :  { %v391_v19 = vmul.f32 %v387_v15, %v387_v15  ;;  %v392_v20 = vmul.f32 %v388_v16, %v388_v16  ;;  %v393_v21 = vadd.f32 %v390_v18, %v389_v17  ;;  %p826_p1 = scmp.ne.s32.totalorder %s576_s4, %s825_s18  ;;  %p831_p3 = scmp.lt.s32.totalorder %s825_s18, %s825_s18 }
 0x204   :  { %v394_v22 = vrot.slane %v393_v21, 4  ;;  %v400_v23 = vadd.f32 %v392_v20, %v391_v19  ;;  %p832_p4 = por %p831_p3, %p830_p2 }
 0x206   :  { %v395_v24 = vadd.f32 %v394_v22, %v393_v21  ;;  %v401_v25 = vrot.slane %v400_v23, 4  ;;  %p833_p5 = pnand %p832_p4, %p826_p1 }
 0x208   :  { %v396_v26 = vrot.slane %v395_v24, 2  ;;  %v402_v27 = vadd.f32 %v401_v25, %v400_v23 }
 0x20a   :  { %v397_v28 = vadd.f32 %v396_v26, %v395_v24  ;;  %v403_v29 = vrot.slane %v402_v27, 2 }
 0x20c   :  { %v398_v30 = vrot.slane %v397_v28, 1  ;;  %v404_v31 = vadd.f32 %v403_v29, %v402_v27 }
 0x20e   :  { %v405_v32 = vrot.slane %v404_v31, 1  ;;  %v399_v33 = vadd.f32 %v398_v30, %v397_v28 }
 0x210   :  { %v406_v34 = vadd.f32 %v405_v32, %v404_v31 }
 0x212   :  { %v409_v35 = vsel %vm279_vm2, %v406_v34, %v399_v33 }
 0x213   :  { %715 = vmatmul.mubr.f32.vlgmr.msra.gmra.mxu1 %v409_v35 }
 0x2d3   :  { %v477_v36 = vpop.f32.mrf.mxu1 }
 0x2d4   :  { %v478_v37 = vadd.f32 1e-05, %v477_v36 }
 0x2d5   :  { %v716_v38 = vpop.f32.mrf.mxu1 }
 0x2d6   :  { %747 = vrsqrt.f32 %v478_v37 }
 0x2e3   :  { %v748_v40 = vpop.eup %747 }
 0x2e4   :  { %v489_v41 = vmul.f32 %v748_v40, %v607_v39 }
 0x2e6   :  { %v497_v42 = vrot.slane %v489_v41, %v358_v4 }
 0x2e8   :  { %v498_v43 = vcombine.high %v497_v42, %v497_v42  ;;  %v505_v44 = vrot.slane %v497_v42, %v358_v4 }
 0x2ea   :  { %v512_v45 = vrot.slane %v498_v43, %v358_v4  ;;  %v516_v46 = vrot.slane %v505_v44, %v377_v7 }
 0x2ec   :  { %v520_v48 = vrot.slane %v512_v45, %v377_v7  ;;  %v523_v49 = vmul.f32 %v516_v46, %v385_v14  ;;  %v524_v50 = vmul.f32 %v516_v46, %v386_v1 }
 0x2ee   :  { %v525_v51 = vmul.f32 %v520_v48, %v387_v15  ;;  %v526_v52 = vmul.f32 %v520_v48, %v388_v16  ;;  %v534_v53 = vadd.f32 %v608_v47, %v523_v49  ;;  %v535_v54 = vadd.f32 %v608_v47, %v524_v50 }
 0x2f0   :  { %v536_v55 = vadd.f32 %v608_v47, %v525_v51  ;;  %v537_v56 = vadd.f32 %v608_v47, %v526_v52  ;;  %v609_v57 = vmul.f32 -1.442695, %v534_v53  ;;  %v610_v58 = vmul.f32 -1.442695, %v535_v54 }
 0x2f2   :  { %749 = vpow2.f32 %v609_v57  ;;  %v611_v59 = vmul.f32 -1.442695, %v536_v55  ;;  %v612_v60 = vmul.f32 -1.442695, %v537_v56 }
 0x2f3   :  { %751 = vpow2.f32 %v610_v58 }
 0x2f4   :  { %753 = vpow2.f32 %v611_v59 }
 0x2f5   :  { %755 = vpow2.f32 %v612_v60 }
 0x2ff   :  { %v750_v61 = vpop.eup %749 }
 0x300   :  { %v752_v62 = vpop.eup %751  ;;  %v550_v63 = vadd.f32 1.0, %v750_v61 }
 0x301   :  { %v754_v0 = vpop.eup %753  ;;  %v551_v2 = vadd.f32 1.0, %v752_v62 }
 0x302   :  { %v756_v3 = vpop.eup %755  ;;  %v552_v4 = vadd.f32 1.0, %v754_v0  ;;  %757 = vrcp.f32 %v550_v63 }
 0x303   :  { %v553_v5 = vadd.f32 1.0, %v756_v3  ;;  %759 = vrcp.f32 %v551_v2 }
 0x304   :  { %761 = vrcp.f32 %v552_v4 }
 0x305   :  { %763 = vrcp.f32 %v553_v5 }
 0x30f   :  { %v758_v6 = vpop.eup %757 }
 0x310   :  { %v760_v7 = vpop.eup %759  ;;  %v562_v8 = vmul.f32 %v758_v6, %v534_v53 }
 0x311   :  { %v762_v9 = vpop.eup %761  ;;  %v563_v10 = vmul.f32 %v760_v7, %v535_v54 }
 0x312   :  { %v764_v11 = vpop.eup %763  ;;  %v564_v12 = vmul.f32 %v762_v9, %v536_v55  ;;  %566 = vst [vmem:[#allocation8] sm:$0xff] %v562_v8 }
 0x313   :  { %v565_v13 = vmul.f32 %v764_v11, %v537_v56  ;;  %567 = vst [vmem:[#allocation8 + $0x8] sm:$0xff] %v563_v10 }
 0x314   :  { %568 = vst [vmem:[#allocation8 + $0x10] sm:$0xff] %v564_v12 }
 0x315   :  { %569 = vst [vmem:[#allocation8 + $0x18] sm:$0xff] %v565_v13 }
 0x316   :  { %836 = shalt.err (!%p833_p5)
}
 0x317   :  { %581 = dma.vmem_to_hbm [thread:$0]  %s576_s4, 512, %s1054_s6, [#allocation4], %s855_s7, %s855_s7, %s856_s8  }
 0x318   :  { %849 = dma.done.wait [#allocation4], 512  }
 0x319   :  { %850 = vsyncadd [#allocation4], 4294966784 }
 0x31a   :  { %585 = vsyncpa [#allocation3], 1 }
 0x31b   :  { %586 = vsyncpa [#allocation6], 1 }
 0x31c   :  { %587 = vsyncpa [#allocation4], 1 }

</bundles_post_ra>
